<compile_context>
chip_gen: v7x
topology: tpu7x:2x2x1
jax: 0.10.0
libtpu: 0.0.40
codegen_flags: <defaults>
</compile_context>

<pallas_src>
import jax
import jax.numpy as jnp
from jax.experimental import pallas as pl
from jax.experimental.pallas import tpu as pltpu


def _ffn_kernel(x_ref, w1_ref, w3_ref, w2_ref, o_ref, acc_ref):
    """One (tm, H) token tile x one ti-chunk of the intermediate dimension."""
    k = pl.program_id(1)

    x = x_ref[...]  # (tm, H) in the compute dtype (bf16)

    # Gate / up projections for this intermediate chunk: f32 accumulation.
    h1 = jnp.dot(x, w1_ref[...], preferred_element_type=jnp.float32)  # (tm, ti)
    h3 = jnp.dot(x, w3_ref[...], preferred_element_type=jnp.float32)  # (tm, ti)

    # SiLU(h1) * h3 in f32; sigmoid goes to the EUP slot, muls on the VPU.
    gated = h1 * jax.nn.sigmoid(h1) * h3

    # Down-projection chunk (bf16 operands, f32 result).
    down = jnp.dot(gated.astype(w2_ref.dtype), w2_ref[...],
                   preferred_element_type=jnp.float32)               # (tm, H)

    # First reduction step writes directly (no zero-fill + RMW pass).
    @pl.when(k == 0)
    def _():
        acc_ref[...] = down

    @pl.when(k != 0)
    def _():
        acc_ref[...] += down

    @pl.when(k == pl.num_programs(1) - 1)
    def _():
        o_ref[...] = acc_ref[...].astype(o_ref.dtype)


def prepack_ffn_weights(w1_t, w3_t, w2_t, *, ti=512,
                        compute_dtype=jnp.bfloat16):
    """One-time weight prep (call at weight-load time, NOT per forward).

    w1_t/w3_t: [H, I], w2_t: [I, H]  (already transposed to [in, out]).
    Returns chunk-major bf16 weights:
      w1_p, w3_p: (kt, H, ti);  w2_p: (kt, ti, H)
    """
    H, I = w1_t.shape
    assert w3_t.shape == (H, I) and w2_t.shape == (I, H)

    ti = min(int(ti), I)
    # (8,128) layout rule: ti must be lane-aligned unless it spans all of I.
    if I % ti != 0 or (ti != I and ti % 128 != 0):
        ti = I
    kt = I // ti

    w1_p = w1_t.reshape(H, kt, ti).transpose(1, 0, 2).astype(compute_dtype)
    w3_p = w3_t.reshape(H, kt, ti).transpose(1, 0, 2).astype(compute_dtype)
    w2_p = w2_t.reshape(kt, ti, H).astype(compute_dtype)
    return w1_p, w3_p, w2_p


def feedforward_pallas(x, w1_p, w3_p, w2_p, *, tm=256, out_dtype=None):
    """SwiGLU FFN forward.  x: [B, S, H]; weights pre-packed chunk-major."""
    B, S, H = x.shape
    kt, Hw, ti = w1_p.shape
    assert Hw == H and w3_p.shape == (kt, H, ti) and w2_p.shape == (kt, ti, H)
    I = kt * ti

    compute_dtype = w1_p.dtype
    out_dtype = out_dtype or x.dtype
    cbytes = jnp.dtype(compute_dtype).itemsize
    obytes = jnp.dtype(out_dtype).itemsize

    def rup(a, b):
        return ((a + b - 1) // b) * b

    # --- token tile sizing ---------------------------------------------------
    M = B * S
    sub = 16 if cbytes == 2 else (32 if cbytes == 1 else 8)   # sublane multiple
    tm_req = rup(max(int(tm), sub), sub)
    # Don't pad tiny M up to tm, and give the parallel axis >= 2 blocks when
    # M allows it (keeps both TensorCores busy on v7x).
    tm_eff = min(tm_req, rup(pl.cdiv(M, 2), sub))
    tm_eff = max(tm_eff, sub)
    m_pad = rup(M, tm_eff)
    grid_m = m_pad // tm_eff
    assert tm_eff % sub == 0 and m_pad % tm_eff == 0

    # --- flatten + cast + pad tokens -----------------------------------------
    x2d = x.reshape(M, H).astype(compute_dtype)
    if m_pad != M:
        # Zero padding rows produce exactly-zero outputs; sliced off below.
        x2d = jnp.pad(x2d, ((0, m_pad - M), (0, 0)))

    # --- explicit VMEM budget (double-buffered tiles + f32 temporaries) ------
    vmem_need = (
        2 * (tm_eff * H * cbytes)          # x tile, double-buffered
        + 2 * (H * ti * cbytes) * 2        # w1 + w3 chunks
        + 2 * (ti * H * cbytes)            # w2 chunk
        + 2 * (tm_eff * H * obytes)        # output tile
        + tm_eff * H * 4                   # f32 accumulator scratch
        + 3 * tm_eff * ti * 4              # h1 / h3 / gated f32 temporaries
        + (4 << 20)                        # Mosaic internal scratch slack
    )
    vmem_limit = int(min(max(vmem_need, 8 << 20), 64 << 20))

    # --- advisory cost estimate (weights re-streamed grid_m times) -----------
    cost = pl.CostEstimate(
        flops=2 * m_pad * (2 * H * I + I * H),
        transcendentals=m_pad * I,                     # sigmoid
        bytes_accessed=m_pad * H * (cbytes + obytes)
        + grid_m * (2 * H * I + I * H) * cbytes,
    )

    out2d = pl.pallas_call(
        _ffn_kernel,
        out_shape=jax.ShapeDtypeStruct((m_pad, H), out_dtype),
        grid_spec=pltpu.PrefetchScalarGridSpec(
            num_scalar_prefetch=0,
            grid=(grid_m, kt),                                   # reduction last
            in_specs=[
                pl.BlockSpec((tm_eff, H), lambda i, k: (i, 0)),      # x tile
                pl.BlockSpec((None, H, ti), lambda i, k: (k, 0, 0)),  # w1 chunk
                pl.BlockSpec((None, H, ti), lambda i, k: (k, 0, 0)),  # w3 chunk
                pl.BlockSpec((None, ti, H), lambda i, k: (k, 0, 0)),  # w2 chunk
            ],
            out_specs=pl.BlockSpec((tm_eff, H), lambda i, k: (i, 0)),
            scratch_shapes=[pltpu.VMEM((tm_eff, H), jnp.float32)],
        ),
        compiler_params=pltpu.CompilerParams(
            # Token axis parallel (megacore sharding), reduction axis arbitrary
            # so the f32 accumulator stays resident and core-local.
            dimension_semantics=("parallel", "arbitrary"),
            vmem_limit_bytes=vmem_limit,
        ),
        cost_estimate=cost,
    )(x2d, w1_p, w3_p, w2_p)

    return out2d[:M].reshape(B, S, H).astype(out_dtype)


def feedforward_ref(x, w1_t, w3_t, w2_t, compute_dtype=jnp.bfloat16):
    """Reference with the same bf16 operand quantization, f32 math."""
    q = lambda a: a.astype(compute_dtype).astype(jnp.float32)
    xq, w1q, w3q, w2q = q(x), q(w1_t), q(w3_t), q(w2_t)
    h1 = xq @ w1q
    h3 = xq @ w3q
    gated = h1 * jax.nn.sigmoid(h1) * h3
    return q(gated) @ w2q


if __name__ == "__main__":
    # Small shapes consistent with the module config:
    # hidden_size=256, intermediate_size=1024; short sequence for the demo.
    batch, seq, hidden, intermediate = 2, 8, 256, 1024

    key = jax.random.PRNGKey(0)
    kx, k1, k2, k3 = jax.random.split(key, 4)

    x = jax.random.normal(kx, (batch, seq, hidden), dtype=jnp.float32)

    # Deterministic "kaiming-uniform-like" init, stored transposed ([in, out]).
    def init_linear_t(k, fan_in, fan_out):
        bound = 1.0 / (fan_in ** 0.5)
        return jax.random.uniform(k, (fan_in, fan_out), jnp.float32,
                                  minval=-bound, maxval=bound)

    w1_t = init_linear_t(k1, hidden, intermediate)   # w1: H -> I
    w3_t = init_linear_t(k3, hidden, intermediate)   # w3: H -> I
    w2_t = init_linear_t(k2, intermediate, hidden)   # w2: I -> H

    # One-time weight prep (hoisted out of the forward path).
    w1_p, w3_p, w2_p = prepack_ffn_weights(w1_t, w3_t, w2_t, ti=512,
                                           compute_dtype=jnp.bfloat16)

    out = feedforward_pallas(x, w1_p, w3_p, w2_p, tm=256)
    out = jax.block_until_ready(out)

    ref = feedforward_ref(x, w1_t, w3_t, w2_t)
    assert out.shape == (batch, seq, hidden)
    assert jnp.allclose(out.astype(jnp.float32), ref, atol=1e-2, rtol=1e-2), \
        "mismatch vs reference"

    print("KERNEL_OK")
</pallas_src>

<mosaic_0001>
module attributes {stable_mosaic.version = 11 : i64} {
  func.func @_ffn_kernel(%arg0: i32, %arg1: i32, %arg2: memref<16x256xbf16, #tpu.memory_space<vmem>>, %arg3: memref<1x256x512xbf16, #tpu.memory_space<vmem>>, %arg4: memref<1x256x512xbf16, #tpu.memory_space<vmem>>, %arg5: memref<1x512x256xbf16, #tpu.memory_space<vmem>>, %arg6: memref<16x256xf32, #tpu.memory_space<vmem>>, %arg7: memref<16x256xf32, #tpu.memory_space<vmem>>) attributes {dimension_semantics = [#tpu.dimension_semantics<parallel>, #tpu.dimension_semantics<arbitrary>], iteration_bounds = array<i64: 1, 2>, scalar_prefetch = 0 : i64, scratch_operands = 1 : i64, tpu.core_type = #tpu.core_type<tc>, window_params = [{transform_indices = @transform_0, window_bounds = array<i64: 16, 256>}, {transform_indices = @transform_1, window_bounds = array<i64: 1, 256, 512>}, {transform_indices = @transform_2, window_bounds = array<i64: 1, 256, 512>}, {transform_indices = @transform_3, window_bounds = array<i64: 1, 512, 256>}, {transform_indices = @transform_4, window_bounds = array<i64: 16, 256>}]} {
    %c0 = arith.constant 0 : index
    %c0_0 = arith.constant 0 : index
    %0 = vector.load %arg2[%c0, %c0_0] : memref<16x256xbf16, #tpu.memory_space<vmem>>, vector<16x256xbf16>
    %c0_1 = arith.constant 0 : index
    %c0_2 = arith.constant 0 : index
    %c0_3 = arith.constant 0 : index
    %1 = vector.load %arg3[%c0_1, %c0_2, %c0_3] : memref<1x256x512xbf16, #tpu.memory_space<vmem>>, vector<1x256x512xbf16>
    %2 = vector.shape_cast %1 : vector<1x256x512xbf16> to vector<256x512xbf16>
    %cst = arith.constant dense<0.000000e+00> : vector<16x512xf32>
    %3 = tpu.matmul %0, %2, %cst {dimension_numbers = #tpu.dot_dimension_numbers<[1], [0], [0], [1], [0, 0, 1, 1], [], []>} : vector<16x256xbf16>, vector<256x512xbf16>, vector<16x512xf32> -> vector<16x512xf32>
    %c0_4 = arith.constant 0 : index
    %c0_5 = arith.constant 0 : index
    %c0_6 = arith.constant 0 : index
    %4 = vector.load %arg4[%c0_4, %c0_5, %c0_6] : memref<1x256x512xbf16, #tpu.memory_space<vmem>>, vector<1x256x512xbf16>
    %5 = vector.shape_cast %4 : vector<1x256x512xbf16> to vector<256x512xbf16>
    %cst_7 = arith.constant dense<0.000000e+00> : vector<16x512xf32>
    %6 = tpu.matmul %0, %5, %cst_7 {dimension_numbers = #tpu.dot_dimension_numbers<[1], [0], [0], [1], [0, 0, 1, 1], [], []>} : vector<16x256xbf16>, vector<256x512xbf16>, vector<16x512xf32> -> vector<16x512xf32>
    %7 = arith.negf %3 : vector<16x512xf32>
    %8 = math.exp %7 : vector<16x512xf32>
    %cst_8 = arith.constant 1.000000e+00 : f32
    %9 = vector.broadcast %cst_8 : f32 to vector<16x512xf32>
    %10 = arith.addf %9, %8 : vector<16x512xf32>
    %11 = arith.divf %9, %10 : vector<16x512xf32>
    %12 = arith.mulf %3, %11 : vector<16x512xf32>
    %13 = arith.mulf %12, %6 : vector<16x512xf32>
    %14 = arith.truncf %13 : vector<16x512xf32> to vector<16x512xbf16>
    %c0_9 = arith.constant 0 : index
    %c0_10 = arith.constant 0 : index
    %c0_11 = arith.constant 0 : index
    %15 = vector.load %arg5[%c0_9, %c0_10, %c0_11] : memref<1x512x256xbf16, #tpu.memory_space<vmem>>, vector<1x512x256xbf16>
    %16 = vector.shape_cast %15 : vector<1x512x256xbf16> to vector<512x256xbf16>
    %cst_12 = arith.constant dense<0.000000e+00> : vector<16x256xf32>
    %17 = tpu.matmul %14, %16, %cst_12 {dimension_numbers = #tpu.dot_dimension_numbers<[1], [0], [0], [1], [0, 0, 1, 1], [], []>} : vector<16x512xbf16>, vector<512x256xbf16>, vector<16x256xf32> -> vector<16x256xf32>
    %c0_i32 = arith.constant 0 : i32
    %18 = arith.cmpi eq, %arg1, %c0_i32 : i32
    %19 = arith.extui %18 : i1 to i32
    %c0_i32_13 = arith.constant 0 : i32
    %20 = arith.cmpi ne, %19, %c0_i32_13 : i32
    scf.if %20 {
      %c0_17 = arith.constant 0 : index
      %c0_18 = arith.constant 0 : index
      %27 = vector.load %arg7[%c0_17, %c0_18] : memref<16x256xf32, #tpu.memory_space<vmem>>, vector<16x256xf32>
      tpu.vector_store %arg7[%c0_17, %c0_18], %17 {strides = array<i32>} : memref<16x256xf32, #tpu.memory_space<vmem>>, vector<16x256xf32>,
    } else {
    }
    %c0_i32_14 = arith.constant 0 : i32
    %21 = arith.cmpi ne, %arg1, %c0_i32_14 : i32
    %22 = arith.extui %21 : i1 to i32
    %c0_i32_15 = arith.constant 0 : i32
    %23 = arith.cmpi ne, %22, %c0_i32_15 : i32
    scf.if %23 {
      %c0_17 = arith.constant 0 : index
      %c0_18 = arith.constant 0 : index
      %27 = vector.load %arg7[%c0_17, %c0_18] : memref<16x256xf32, #tpu.memory_space<vmem>>, vector<16x256xf32>
      %28 = arith.addf %27, %17 : vector<16x256xf32>
      %c0_19 = arith.constant 0 : index
      %c0_20 = arith.constant 0 : index
      %29 = vector.load %arg7[%c0_19, %c0_20] : memref<16x256xf32, #tpu.memory_space<vmem>>, vector<16x256xf32>
      tpu.vector_store %arg7[%c0_19, %c0_20], %28 {strides = array<i32>} : memref<16x256xf32, #tpu.memory_space<vmem>>, vector<16x256xf32>,
    } else {
    }
    %c1_i32 = arith.constant 1 : i32
    %24 = arith.cmpi eq, %arg1, %c1_i32 : i32
    %25 = arith.extui %24 : i1 to i32
    %c0_i32_16 = arith.constant 0 : i32
    %26 = arith.cmpi ne, %25, %c0_i32_16 : i32
    scf.if %26 {
      %c0_17 = arith.constant 0 : index
      %c0_18 = arith.constant 0 : index
      %27 = vector.load %arg7[%c0_17, %c0_18] : memref<16x256xf32, #tpu.memory_space<vmem>>, vector<16x256xf32>
      %c0_19 = arith.constant 0 : index
      %c0_20 = arith.constant 0 : index
      %28 = vector.load %arg6[%c0_19, %c0_20] : memref<16x256xf32, #tpu.memory_space<vmem>>, vector<16x256xf32>
      tpu.vector_store %arg6[%c0_19, %c0_20], %27 {strides = array<i32>} : memref<16x256xf32, #tpu.memory_space<vmem>>, vector<16x256xf32>,
    } else {
    }
    return
  }
  func.func @transform_0(%arg0: i32, %arg1: i32) -> (i32, i32) {
    %c0_i32 = arith.constant 0 : i32
    %c0_i32_0 = arith.constant 0 : i32
    return %arg0, %c0_i32 : i32, i32
  }
  func.func @transform_1(%arg0: i32, %arg1: i32) -> (i32, i32, i32) {
    %c0_i32 = arith.constant 0 : i32
    %c0_i32_0 = arith.constant 0 : i32
    %c0_i32_1 = arith.constant 0 : i32
    return %arg1, %c0_i32, %c0_i32_0 : i32, i32, i32
  }
  func.func @transform_2(%arg0: i32, %arg1: i32) -> (i32, i32, i32) {
    %c0_i32 = arith.constant 0 : i32
    %c0_i32_0 = arith.constant 0 : i32
    %c0_i32_1 = arith.constant 0 : i32
    return %arg1, %c0_i32, %c0_i32_0 : i32, i32, i32
  }
  func.func @transform_3(%arg0: i32, %arg1: i32) -> (i32, i32, i32) {
    %c0_i32 = arith.constant 0 : i32
    %c0_i32_0 = arith.constant 0 : i32
    %c0_i32_1 = arith.constant 0 : i32
    return %arg1, %c0_i32, %c0_i32_0 : i32, i32, i32
  }
  func.func @transform_4(%arg0: i32, %arg1: i32) -> (i32, i32) {
    %c0_i32 = arith.constant 0 : i32
    %c0_i32_0 = arith.constant 0 : i32
    return %arg0, %c0_i32 : i32, i32
  }
}

</mosaic_0001>

<bundles_post_ra>
// kernel: tpu_custom_call.1
= control target key start
LH: loop header
LB: loop body
LE: loop exit
PB: predicated region body
PF: predicated region fallthrough
CT: control target
= control target key end

     0   :  { %s3356_s0 = inlined_call_operand.hbm [shape: bf16[16,256], index: 0, kind: input, shape index: {}]   ;;  %s3357_s1 = inlined_call_operand.hbm [shape: bf16[2,256,512], index: 1, kind: input, shape index: {}]   ;;  %s3358_s2 = inlined_call_operand.hbm [shape: bf16[2,256,512], index: 2, kind: input, shape index: {}]   ;;  %s3359_s3 = inlined_call_operand.hbm [shape: bf16[2,512,256], index: 3, kind: input, shape index: {}]   ;;  %s3360_s4 = inlined_call_operand.hbm [shape: f32[16,256], index: 4, kind: output, shape index: {}]  }
   0x1   :  { %3373 = sst [smem:[#allocation18_spill]] %s3357_s1 }
   0x2   :  { %9 = vsyncpa [#allocation4], 0 }
   0x3   :  { %10 = vsyncpa [#allocation7], 0 }
   0x4   :  { %12 = vsyncpa [#allocation7 + $0x1], 0 }
   0x5   :  { %13 = vsyncpa [#allocation10], 0 }
   0x6   :  { %15 = vsyncpa [#allocation10 + $0x1], 0 }
   0x7   :  { %16 = vsyncpa [#allocation5], 0  ;;  %s2871_s15 = smov 0   ;;  %s2873_s16 = smov 0  }
   0x8   :  { %s2875_s17 = smov 0   ;;  %s2877_s18 = smov 0  }
   0x9   :  { %s2879_s19 = smov 0   ;;  %s2881_s20 = smov 0  }
   0xa LB: > { %3374 = sst [smem:[#allocation16_spill]] %s2829_s19  ;;  %s31_s21 = sadd.s32 1, %s2829_s19  ;;  %s2833_s20 = sphi %s2881_s20, %s22_s20   ;;  %s2829_s19 = sphi %s2879_s19, %s3392_s19   ;;  %s2825_s18 = sphi %s2877_s18, %s3391_s18   ;;  %s2821_s17 = sphi %s2875_s17, %s3395_s17   ;;  %s2817_s16 = sphi %s2873_s16, %s3394_s16   ;;  %s2813_s15 = sphi %s2871_s15, %s3393_s15  }
   0xb   : > { %s67_s22 = sadd.s32 1, %s2821_s17  ;;  %p32_p0 = scmp.ge.s32.totalorder %s31_s21, 2 }
   0xc   : > { %p74_p1 = scmp.ne.s32.totalorder %s2821_s17, %s2817_s16  ;;  %p75_p2 = scmp.eq.s32.totalorder %s2833_s20, 0 }
   0xd   : > { %s3397_s21 = smov (%p32_p0, %s31_s21), 0  ;;  %p2244_p4 = scmp.lt.s32.totalorder %s2833_s20, 2 }
   0xe   : > { %3375 = sst [smem:[#allocation17_spill]] %s3397_s21  ;;  %p76_p3 = por %p75_p2, %p74_p1 }
   0xf   : > { %s64_s23 = ssub.s32 %s2829_s19, %s3397_s21  ;;  %s199_s24 = sand.u32 1, %s2833_s20  }
  0x10   : > { %p65_p5 = scmp.eq.s32.totalorder %s64_s23, 0  ;;  %s3361_s25 = sand.u32 1, %s2821_s17  }
  0x11   : > { %s2914_s26 = sshll.u32 %s2829_s19, 13  ;;  %s2921_s28 = sshll.u32 %s3361_s25, 9 }
  0x12   : > { %s2917_s27 = scalar_select %p65_p5, %s2821_s17, %s67_s22  }
  0x13   : > { %s3376_s1 = sld [smem:[#allocation18_spill]]  ;;  %p2929_p6 = pnand %p2244_p4, %p76_p3 }
  0x14   : > { %s203_s7 = scalar_lea.vmem [#allocation6], %s2921_s28  ;;  %s2936_s9 = scalar_lea.sflag [#allocation7], %s199_s24 }
  0x15   : > { %s3377_s6 = scalar_select %p2929_p6, 1, 0 }
  0x16   : > { %s210_s8 = sshll.u32 %s203_s7, 4  ;;  %p2942_p8 = pneg %p2929_p6  ;;  %s2934_s8 = int_to_ptr.vmem [resolvable:$true] %s210_s8 }
  0x18   : > { %s3378_s11 = scalar_select %p2942_p8, 1, 0 }
  0x19   : > { %s2927_s5 = scalar_lea.hbm %s3376_s1, %s2914_s26  ;;  %s2632_s14 = scalar_lea.hbm %s3376_s1, 16384 }
  0x1a   : > { %s2627_s10 = scalar_lea.hbm %s2927_s5, 8192  ;;  %p2633_p11 = scmp.lt.u32.totalorder %s2927_s5, %s3376_s1 }
  0x1b   : > { %p2628_p7 = scmp.ne.s32.totalorder %s2927_s5, %s2627_s10  ;;  %p2634_p12 = scmp.lt.u32.totalorder %s2632_s14, %s2627_s10 }
  0x1c   : > { %p2636_p0 = scmp.lt.u32.totalorder %s2627_s10, %s2927_s5 }
  0x1d   : > { %p2630_p9 = pnand %p2942_p8, %p2628_p7  ;;  %p2635_p13 = por %p2634_p12, %p2633_p11 }
  0x1f   : > { %p2631_p10 = pneg %p2630_p9  ;;  %p2637_p1 = por %p2636_p0, %p2635_p13 }
  0x21   : > { %p2638_p2 = pnand %p2637_p1, %p2631_p10 }
  0x23   : > { %2641 = shalt.err (!%p2638_p2)
}
  0x24   : > { %s2642_s24 = scalar_lea.vmem %s2934_s8, 8192  ;;  %s2835_s29 = smov [#allocation6]  }
  0x25   : > { %p2643_p3 = scmp.ne.s32.totalorder %s2934_s8, %s2642_s24  ;;  %s2647_s30 = sshll.u32 %s2835_s29, 4  ;;  %s2648_s30 = int_to_ptr.vmem [resolvable:$false] %s2647_s30 }
  0x26   : > { %s2649_s7 = scalar_lea.vmem %s2648_s30, 16384  ;;  %p2650_p7 = scmp.lt.s32.totalorder %s2934_s8, %s2648_s30 }
  0x27   : > { %p2645_p4 = pnand %p2643_p3, %p2942_p8  ;;  %p2651_p9 = scmp.lt.s32.totalorder %s2649_s7, %s2642_s24 }
  0x29   : > { %p2646_p5 = pneg %p2645_p4  ;;  %p2652_p11 = por %p2651_p9, %p2650_p7 }
  0x2b   : > { %p2653_p12 = pnand %p2652_p11, %p2646_p5 }
  0x2d   : > { %2656 = shalt.err (!%p2653_p12)
}
  0x2e   : > { %s3362_s10 = smov 256   ;;  %s3363_s12 = smov 16  }
  0x2f   : > { %2236 = dma.hbm_to_vmem [thread:$0]  (!%p2929_p6), %s2927_s5, 8192, %s2934_s8, %s2936_s9, %s3362_s10, %s3362_s10, %s3363_s12  }
  0x30   : > { %s2970_s13 = sadd.s32 4294967295, %s2833_s20   ;;  %p80_p10 = scmp.ne.s32.totalorder %s2817_s16, %s2813_s15 }
  0x31   : > { %p3364_p13 = scmp.eq.s32.totalorder %s2970_s13, 0  ;;  %p1982_p0 = scmp.ge.s32.totalorder %s2833_s20, 1 }
  0x32   : > { %p169_p1 = scmp.lt.s32.totalorder %s2833_s20, 3  ;;  %s2838_s5 = smov [#allocation3]  }
  0x33   : > { %p2979_p2 = por %p3364_p13, %p80_p10  ;;  %s185_s8 = sshll.u32 %s2838_s5, 4  ;;  %s186_s8 = int_to_ptr.vmem [resolvable:$true] %s185_s8 }
  0x34   : > { %p2983_p3 = pnand %p1982_p0, %p169_p1  ;;  %s2999_s29 = scalar_lea.hbm %s3358_s2, %s2914_s26 }
  0x35   : > { %s3379_s14 = scalar_select %p2979_p2, 1, 0 }
  0x36   : > { %s3380_s22 = scalar_select %p2983_p3, 1, 0 }
  0x37   : > { %p2229_p4 = pneg %p2983_p3  ;;  %s224_s30 = scalar_lea.vmem [#allocation8], %s2921_s28 }
  0x38   : > { %s231_s7 = sshll.u32 %s224_s30, 4  ;;  %s2657_s10 = scalar_lea.hbm %s3356_s0, 256  ;;  %s3002_s7 = int_to_ptr.vmem [resolvable:$true] %s231_s7 }
  0x39   : > { %p2991_p5 = pnand %p2229_p4, %p3364_p13  ;;  %p2658_p7 = scmp.ne.s32.totalorder %s3356_s0, %s2657_s10 }
  0x3a   : > { %p2664_p10 = scmp.lt.u32.totalorder %s2657_s10, %s3356_s0 }
  0x3b   : > { %p2659_p9 = pneg %p2991_p5 }
  0x3d   : > { %p2660_p11 = pnand %p2659_p9, %p2658_p7 }
  0x3f   : > { %p2661_p12 = pneg %p2660_p11 }
  0x41   : > { %p2666_p0 = pnand %p2664_p10, %p2661_p12 }
  0x43   : > { %2669 = shalt.err (!%p2666_p0)
}
  0x44   : > { %s2670_s30 = scalar_lea.vmem %s186_s8, 256  ;;  %p2678_p2 = scmp.lt.s32.totalorder %s186_s8, %s186_s8 }
  0x45   : > { %p2671_p1 = scmp.ne.s32.totalorder %s186_s8, %s2670_s30  ;;  %p2679_p3 = scmp.lt.s32.totalorder %s2670_s30, %s2670_s30 }
  0x47   : > { %p2673_p4 = pnand %p2671_p1, %p2659_p9  ;;  %p2680_p6 = por %p2679_p3, %p2678_p2 }
  0x49   : > { %p2674_p13 = pneg %p2673_p4 }
  0x4b   : > { %p2681_p8 = pnand %p2680_p6, %p2674_p13 }
  0x4d   : > { %2684 = shalt.err (!%p2681_p8)
}
  0x4e   : > { %s2839_s1 = smov 128   ;;  %s2840_s25 = smov 8  }
  0x4f   : > { %2232 = dma.hbm_to_vmem [thread:$0]  (!%p2991_p5), %s3356_s0, 256, %s186_s8, [#allocation4], %s2839_s1, %s2839_s1, %s2840_s25  }
  0x50   : > { %s2685_s5 = scalar_lea.hbm %s2999_s29, 8192  ;;  %p3382_p6 = scmp.ne.s32.totalorder %s3378_s11, 0 }
  0x51   : > { %p2686_p2 = scmp.ne.s32.totalorder %s2999_s29, %s2685_s5  ;;  %s2690_s30 = scalar_lea.hbm %s3358_s2, 16384 }
  0x52   : > { %p2691_p3 = scmp.lt.u32.totalorder %s2999_s29, %s3358_s2  ;;  %p2692_p7 = scmp.lt.u32.totalorder %s2690_s30, %s2685_s5 }
  0x53   : > { %p2688_p8 = pnand %p2686_p2, %p3382_p6  ;;  %p2694_p11 = scmp.lt.u32.totalorder %s2685_s5, %s2999_s29 }
  0x54   : > { %p2693_p9 = por %p2692_p7, %p2691_p3 }
  0x55   : > { %p2689_p13 = pneg %p2688_p8 }
  0x56   : > { %p2695_p12 = por %p2694_p11, %p2693_p9 }
  0x58   : > { %p2696_p10 = pnand %p2695_p12, %p2689_p13 }
  0x5a   : > { %2699 = shalt.err (!%p2696_p10)
}
  0x5b   : > { %s2700_s8 = scalar_lea.vmem %s3002_s7, 8192  ;;  %s2841_s15 = smov [#allocation8]  }
  0x5c   : > { %p2701_p5 = scmp.ne.s32.totalorder %s3002_s7, %s2700_s8  ;;  %s2705_s10 = sshll.u32 %s2841_s15, 4  ;;  %s2706_s10 = int_to_ptr.vmem [resolvable:$false] %s2705_s10 }
  0x5d   : > { %s2707_s19 = scalar_lea.vmem %s2706_s10, 16384  ;;  %p2708_p4 = scmp.lt.s32.totalorder %s3002_s7, %s2706_s10 }
  0x5e   : > { %p2703_p0 = pnand %p2701_p5, %p3382_p6  ;;  %p2709_p2 = scmp.lt.s32.totalorder %s2707_s19, %s2700_s8 }
  0x60   : > { %p2704_p1 = pneg %p2703_p0  ;;  %p2710_p8 = por %p2709_p2, %p2708_p4 }
  0x62   : > { %p2711_p3 = pnand %p2710_p8, %p2704_p1 }
  0x64   : > { %2714 = shalt.err (!%p2711_p3)
}
  0x65   : > { %p3383_p13 = scmp.ne.s32.totalorder %s3377_s6, 0  ;;  %s3384_s21 = smov 16  }
  0x66   : > { %s3385_s12 = smov 256   ;;  %s3052_s24 = scalar_lea.hbm %s3359_s3, %s2914_s26 }
  0x67   : > { %2239 = dma.hbm_to_vmem [thread:$0]  (!%p3383_p13), %s2999_s29, 8192, %s3002_s7, %s2936_s9, %s3385_s12, %s3385_s12, %s3384_s21  }
  0x68   : > { %s245_s30 = scalar_lea.vmem [#allocation9], %s2921_s28  ;;  %s3386_s15 = sand.u32 1, %s2821_s17  }
  0x69   : > { %s252_s8 = sshll.u32 %s245_s30, 4  ;;  %s3059_s10 = scalar_lea.sflag [#allocation10], %s3386_s15  ;;  %s3055_s8 = int_to_ptr.vmem [resolvable:$true] %s252_s8 }
  0x6a   : > { %s2715_s19 = scalar_lea.hbm %s3052_s24, 8192  ;;  %s2720_s26 = scalar_lea.hbm %s3359_s3, 16384 }
  0x6b   : > { %p2716_p7 = scmp.ne.s32.totalorder %s3052_s24, %s2715_s19  ;;  %p2721_p12 = scmp.lt.u32.totalorder %s3052_s24, %s3359_s3 }
  0x6c   : > { %p2722_p10 = scmp.lt.u32.totalorder %s2720_s26, %s2715_s19  ;;  %p2724_p0 = scmp.lt.u32.totalorder %s2715_s19, %s3052_s24 }
  0x6d   : > { %p2718_p9 = pnand %p2716_p7, %p3382_p6 }
  0x6e   : > { %p2723_p5 = por %p2722_p10, %p2721_p12 }
  0x6f   : > { %p2719_p11 = pneg %p2718_p9 }
  0x70   : > { %p2725_p1 = por %p2724_p0, %p2723_p5 }
  0x72   : > { %p2726_p4 = pnand %p2725_p1, %p2719_p11 }
  0x74   : > { %2729 = shalt.err (!%p2726_p4)
}
  0x75   : > { %s2730_s28 = scalar_lea.vmem %s3055_s8, 8192  ;;  %s2842_s12 = smov [#allocation9]  }
  0x76   : > { %p2731_p2 = scmp.ne.s32.totalorder %s3055_s8, %s2730_s28  ;;  %s2735_s5 = sshll.u32 %s2842_s12, 4  ;;  %s2736_s5 = int_to_ptr.vmem [resolvable:$false] %s2735_s5 }
  0x77   : > { %s2737_s23 = scalar_lea.vmem %s2736_s5, 16384  ;;  %p2738_p7 = scmp.lt.s32.totalorder %s3055_s8, %s2736_s5 }
  0x78   : > { %p2733_p8 = pnand %p2731_p2, %p3382_p6  ;;  %p2739_p9 = scmp.lt.s32.totalorder %s2737_s23, %s2730_s28 }
  0x7a   : > { %p2734_p3 = pneg %p2733_p8  ;;  %p2740_p12 = por %p2739_p9, %p2738_p7 }
  0x7c   : > { %p2741_p10 = pnand %p2740_p12, %p2734_p3 }
  0x7e   : > { %2744 = shalt.err (!%p2741_p10)
}
  0x7f   : > { %2242 = dma.hbm_to_vmem [thread:$0]  (!%p3383_p13), %s3052_s24, 8192, %s3055_s8, %s3059_s10, %s2839_s1, %s2839_s1, %s2840_s25  }
  0x80   : > { %p3387_p6 = scmp.ne.s32.totalorder %s3380_s22, 0 }
  0x81   : > { %p3388_p11 = scmp.eq.s32.totalorder (!%p3387_p6), %s2970_s13, 0 }
  0x82   : > { %264 = sbr.rel (%p3387_p6) target bundleno = 820 (0x334), region = 36 }
  0x89   : > { %2796 = dma.done.wait (%p3388_p11), [#allocation4], 256   ;;  %p3389_p5 = pmov %p3388_p11 }
  0x8a   : > { %s270_s6 = sand.u32 1, %s2970_s13   ;;  %s272_s11 = sand.u32 1, %s2817_s16  }
  0x8b   : > { %2798 = vsyncadd (%p3389_p5), [#allocation4], 4294967040  ;;  %s1996_s30 = sshll.u32 %s272_s11, 9  ;;  %s271_s15 = scalar_lea.sflag [#allocation7], %s270_s6 }
  0x8c   : > { %s3094_s19 = scalar_lea.vmem [#allocation6], %s1996_s30  ;;  %p3390_p0 = scmp.ne.s32.totalorder %s3379_s14, 0 }
  0x8e   : > { %2800 = dma.done.wait (%p3390_p0), %s271_s15, 16384  }
  0x8f   : > { %2802 = vsyncadd (%p3390_p0), %s271_s15, 4294950912  ;;  %s3100_s22 = scalar_lea.vmem [#allocation8], %s1996_s30  ;;  %s289_s1 = scalar_lea.sflag [#allocation10], %s272_s11 }
  0x90   : > { %s3102_s25 = scalar_lea.vmem [#allocation9], %s1996_s30 }
  0x91   : > { %2804 = dma.done.wait (%p3390_p0), %s289_s1, 8192  }
  0x92   : > { %2806 = vsyncadd (%p3390_p0), %s289_s1, 4294959104  ;;  %v2304_v0 = vld [vmem:[%s3094_s19 + $0x4] ss:$16 sps:$4 sm:$0xff]   ;;  %v2306_v1 = vld [vmem:[%s3094_s19] ss:$16 sps:$4 sm:$0xff]   ;;  %p2201_p13 = scmp.ne.s32.totalorder %s2825_s18, 0 }
  0x93   : > { %720 = vmatprep.subr.bf16.mxu1 %v2304_v0  ;;  %v2307_v2 = vld [vmem:[%s3094_s19 + $0x24] ss:$16 sps:$4 sm:$0xff]   ;;  %v2309_v3 = vld [vmem:[%s3094_s19 + $0x20] ss:$16 sps:$4 sm:$0xff]   ;;  %v2384_v60 = vld [vmem:[%s3094_s19 + $0xc] ss:$16 sps:$4 sm:$0xff]  }
  0x94   : > { %721 = vmatpush1.bf16.msra.mxu1 %v2306_v1  ;;  %v2310_v4 = vld [vmem:[%s3094_s19 + $0x44] ss:$16 sps:$4 sm:$0xff]   ;;  %v2312_v5 = vld [vmem:[%s3094_s19 + $0x40] ss:$16 sps:$4 sm:$0xff]   ;;  %v2382_v63 = vld [vmem:[%s3094_s19 + $0x8] ss:$16 sps:$4 sm:$0xff]  }
  0x95   : > { %722 = vmatprep.subr.bf16.mxu1 %v2307_v2  ;;  %v2313_v6 = vld [vmem:[%s3094_s19 + $0x64] ss:$16 sps:$4 sm:$0xff]   ;;  %v2315_v7 = vld [vmem:[%s3094_s19 + $0x60] ss:$16 sps:$4 sm:$0xff]   ;;  %v2390_v1 = vld [vmem:[%s3094_s19 + $0x2c] ss:$16 sps:$4 sm:$0xff]  }
  0x96   : > { %v2327_v8 = vld [vmem:[%s3100_s22 + $0x4] ss:$16 sps:$4 sm:$0xff]   ;;  %v2330_v9 = vld [vmem:[%s3100_s22] ss:$16 sps:$4 sm:$0xff]  }
  0x97   : > { %v2316_v10 = vld [vmem:[%s3094_s19 + $0x84] ss:$16 sps:$4 sm:$0xff]   ;;  %1190 = vmatprep.subr.bf16.mxu0 %v2327_v8  ;;  %v2336_v12 = vld [vmem:[%s3100_s22 + $0x20] ss:$16 sps:$4 sm:$0xff]   ;;  %v2402_v8 = vld [vmem:[%s3094_s19 + $0x6c] ss:$16 sps:$4 sm:$0xff]  }
  0x98   : > { %723 = vmatpush1.bf16.msra.mxu1 %v2309_v3  ;;  %v2333_v11 = vld [vmem:[%s3100_s22 + $0x24] ss:$16 sps:$4 sm:$0xff]   ;;  %1191 = vmatpush1.bf16.msra.mxu0 %v2330_v9  ;;  %v2318_v13 = vld [vmem:[%s3094_s19 + $0x80] ss:$16 sps:$4 sm:$0xff]   ;;  %v2388_v3 = vld [vmem:[%s3094_s19 + $0x28] ss:$16 sps:$4 sm:$0xff]  }
  0x99   : > { %724 = vmatprep.subr.bf16.mxu1 %v2310_v4  ;;  %1192 = vmatprep.subr.bf16.mxu0 %v2333_v11  ;;  %v2319_v14 = vld [vmem:[%s3094_s19 + $0xa4] ss:$16 sps:$4 sm:$0xff]   ;;  %v2342_v16 = vld [vmem:[%s3100_s22 + $0x40] ss:$16 sps:$4 sm:$0xff]   ;;  %v2400_v9 = vld [vmem:[%s3094_s19 + $0x68] ss:$16 sps:$4 sm:$0xff]  }
  0x9a   : > { %v2339_v15 = vld [vmem:[%s3100_s22 + $0x44] ss:$16 sps:$4 sm:$0xff]   ;;  %v2321_v17 = vld [vmem:[%s3094_s19 + $0xa0] ss:$16 sps:$4 sm:$0xff]   ;;  %v2406_v11 = vld [vmem:[%s3094_s19 + $0x88] ss:$16 sps:$4 sm:$0xff]  }
  0x9b   : > { %v2345_v18 = vld [vmem:[%s3100_s22 + $0x64] ss:$16 sps:$4 sm:$0xff]   ;;  %v2324_v20 = vld [vmem:[%s3094_s19 + $0xc0] ss:$16 sps:$4 sm:$0xff]  }
  0x9c   : > { %725 = vmatpush1.bf16.msra.mxu1 %v2312_v5  ;;  %1193 = vmatpush1.bf16.msra.mxu0 %v2336_v12  ;;  %v2322_v19 = vld [vmem:[%s3094_s19 + $0xc4] ss:$16 sps:$4 sm:$0xff]   ;;  %v2348_v21 = vld [vmem:[%s3100_s22 + $0x60] ss:$16 sps:$4 sm:$0xff]   ;;  %v2396_v5 = vld [vmem:[%s3094_s19 + $0x4c] ss:$16 sps:$4 sm:$0xff]  }
  0x9d   : > { %726 = vmatprep.subr.bf16.mxu1 %v2313_v6  ;;  %1194 = vmatprep.subr.bf16.mxu0 %v2339_v15  ;;  %v2351_v22 = vld [vmem:[%s3100_s22 + $0x84] ss:$16 sps:$4 sm:$0xff]   ;;  %v2354_v24 = vld [vmem:[%s3100_s22 + $0x80] ss:$16 sps:$4 sm:$0xff]   ;;  %v2414_v12 = vld [vmem:[%s3094_s19 + $0xac] ss:$16 sps:$4 sm:$0xff]  }
  0x9e   : > { %v2325_v23 = vld [vmem:[%s3094_s19 + $0xe4] ss:$16 sps:$4 sm:$0xff]   ;;  %v2329_v25 = vld [vmem:[%s3094_s19 + $0xe0] ss:$16 sps:$4 sm:$0xff]   ;;  %v2418_v15 = vld [vmem:[%s3094_s19 + $0xc8] ss:$16 sps:$4 sm:$0xff]  }
  0x9f   : > { %v2357_v26 = vld [vmem:[%s3100_s22 + $0xa4] ss:$16 sps:$4 sm:$0xff]   ;;  %v2335_v28 = vld [vmem:[%s3094_s19 + $0x100] ss:$16 sps:$4 sm:$0xff]  }
  0xa0   : > { %727 = vmatpush1.bf16.msra.mxu1 %v2315_v7  ;;  %1195 = vmatpush1.bf16.msra.mxu0 %v2342_v16  ;;  %v2331_v27 = vld [vmem:[%s3094_s19 + $0x104] ss:$16 sps:$4 sm:$0xff]   ;;  %v2360_v29 = vld [vmem:[%s3100_s22 + $0xa0] ss:$16 sps:$4 sm:$0xff]   ;;  %v2394_v7 = vld [vmem:[%s3094_s19 + $0x48] ss:$16 sps:$4 sm:$0xff]  }
  0xa1   : > { %728 = vmatprep.subr.bf16.mxu1 %v2316_v10  ;;  %1196 = vmatprep.subr.bf16.mxu0 %v2345_v18  ;;  %v2363_v30 = vld [vmem:[%s3100_s22 + $0xc4] ss:$16 sps:$4 sm:$0xff]   ;;  %v2366_v32 = vld [vmem:[%s3100_s22 + $0xc0] ss:$16 sps:$4 sm:$0xff]   ;;  %v2408_v10 = vld [vmem:[%s3094_s19 + $0x8c] ss:$16 sps:$4 sm:$0xff]  }
  0xa2   : > { %v2337_v31 = vld [vmem:[%s3094_s19 + $0x124] ss:$16 sps:$4 sm:$0xff]   ;;  %v2341_v34 = vld [vmem:[%s3094_s19 + $0x120] ss:$16 sps:$4 sm:$0xff]   ;;  %v2426_v18 = vld [vmem:[%s3094_s19 + $0xec] ss:$16 sps:$4 sm:$0xff]  }
  0xa3   : > { %v3141_v33 = vld [vmem:[#allocation3 + $0x4] ss:$8 sps:$4 sm:$0xff]   ;;  %v2372_v37 = vld [vmem:[%s3100_s22 + $0xe0] ss:$16 sps:$4 sm:$0xff]  }
  0xa4   : > { %729 = vmatpush1.bf16.msra.mxu1 %v2318_v13  ;;  %1197 = vmatpush1.bf16.msra.mxu0 %v2348_v21  ;;  %v2369_v35 = vld [vmem:[%s3100_s22 + $0xe4] ss:$16 sps:$4 sm:$0xff]   ;;  %v2347_v38 = vld [vmem:[%s3094_s19 + $0x140] ss:$16 sps:$4 sm:$0xff]   ;;  %v2412_v13 = vld [vmem:[%s3094_s19 + $0xa8] ss:$16 sps:$4 sm:$0xff]  }
  0xa5   : > { %730 = vmatprep.subr.bf16.mxu1 %v2319_v14  ;;  %1198 = vmatprep.subr.bf16.mxu0 %v2351_v22  ;;  %v2343_v36 = vld [vmem:[%s3094_s19 + $0x144] ss:$16 sps:$4 sm:$0xff]   ;;  %v2378_v41 = vld [vmem:[%s3100_s22 + $0x100] ss:$16 sps:$4 sm:$0xff]   ;;  %v2420_v14 = vld [vmem:[%s3094_s19 + $0xcc] ss:$16 sps:$4 sm:$0xff]  }
  0xa6   : > { %752 = vmatprep.mubr.bf16.mxu1 %v3141_v33  ;;  %1222 = vmatprep.mubr.bf16.mxu0 %v3141_v33  ;;  %v2375_v39 = vld [vmem:[%s3100_s22 + $0x104] ss:$16 sps:$4 sm:$0xff]   ;;  %v2353_v42 = vld [vmem:[%s3094_s19 + $0x160] ss:$16 sps:$4 sm:$0xff]   ;;  %v2424_v21 = vld [vmem:[%s3094_s19 + $0xe8] ss:$16 sps:$4 sm:$0xff]  }
  0xa7   : > { %v2349_v40 = vld [vmem:[%s3094_s19 + $0x164] ss:$16 sps:$4 sm:$0xff]   ;;  %v2387_v45 = vld [vmem:[%s3100_s22 + $0x120] ss:$16 sps:$4 sm:$0xff]  }
  0xa8   : > { %731 = vmatpush1.bf16.msra.mxu1 %v2321_v17  ;;  %1199 = vmatpush1.bf16.msra.mxu0 %v2354_v24  ;;  %v2385_v43 = vld [vmem:[%s3100_s22 + $0x124] ss:$16 sps:$4 sm:$0xff]   ;;  %v2359_v46 = vld [vmem:[%s3094_s19 + $0x180] ss:$16 sps:$4 sm:$0xff]   ;;  %v2427_v24 = vld [vmem:[%s3094_s19 + $0x108] ss:$16 sps:$4 sm:$0xff]  }
  0xa9   : > { %732 = vmatprep.subr.bf16.mxu1 %v2322_v19  ;;  %1200 = vmatprep.subr.bf16.mxu0 %v2357_v26  ;;  %v2355_v44 = vld [vmem:[%s3094_s19 + $0x184] ss:$16 sps:$4 sm:$0xff]   ;;  %v2393_v49 = vld [vmem:[%s3100_s22 + $0x140] ss:$16 sps:$4 sm:$0xff]   ;;  %v2432_v26 = vld [vmem:[%s3094_s19 + $0x12c] ss:$16 sps:$4 sm:$0xff]  }
  0xaa   : > { %v2391_v47 = vld [vmem:[%s3100_s22 + $0x144] ss:$16 sps:$4 sm:$0xff]   ;;  %v2365_v50 = vld [vmem:[%s3094_s19 + $0x1a0] ss:$16 sps:$4 sm:$0xff]  }
  0xab   : > { %v2361_v48 = vld [vmem:[%s3094_s19 + $0x1a4] ss:$16 sps:$4 sm:$0xff]   ;;  %v2399_v53 = vld [vmem:[%s3100_s22 + $0x160] ss:$16 sps:$4 sm:$0xff]  }
  0xac   : > { %733 = vmatpush1.bf16.msra.mxu1 %v2324_v20  ;;  %1201 = vmatpush1.bf16.msra.mxu0 %v2360_v29  ;;  %v2397_v51 = vld [vmem:[%s3100_s22 + $0x164] ss:$16 sps:$4 sm:$0xff]   ;;  %v2371_v54 = vld [vmem:[%s3094_s19 + $0x1c0] ss:$16 sps:$4 sm:$0xff]   ;;  %v2430_v29 = vld [vmem:[%s3094_s19 + $0x128] ss:$16 sps:$4 sm:$0xff]  }
  0xad   : > { %734 = vmatprep.subr.bf16.mxu1 %v2325_v23  ;;  %1202 = vmatprep.subr.bf16.mxu0 %v2363_v30  ;;  %v2367_v52 = vld [vmem:[%s3094_s19 + $0x1c4] ss:$16 sps:$4 sm:$0xff]   ;;  %v2405_v57 = vld [vmem:[%s3100_s22 + $0x180] ss:$16 sps:$4 sm:$0xff]   ;;  %v2429_v23 = vld [vmem:[%s3094_s19 + $0x10c] ss:$16 sps:$4 sm:$0xff]  }
  0xae   : > { %v2403_v55 = vld [vmem:[%s3100_s22 + $0x184] ss:$16 sps:$4 sm:$0xff]   ;;  %v2377_v58 = vld [vmem:[%s3094_s19 + $0x1e0] ss:$16 sps:$4 sm:$0xff]  }
  0xaf   : > { %v2373_v56 = vld [vmem:[%s3094_s19 + $0x1e4] ss:$16 sps:$4 sm:$0xff]   ;;  %v3172_v61 = vld [vmem:[#allocation3] ss:$8 sps:$4 sm:$0xff]   ;;  %v2499_v16 = vld [vmem:[%s3102_s25] ss:$8 sps:$4 sm:$0xff]  }
  0xb0   : > { %735 = vmatpush1.bf16.msra.mxu1 %v2329_v25  ;;  %1203 = vmatpush1.bf16.msra.mxu0 %v2366_v32  ;;  %v2409_v59 = vld [vmem:[%s3100_s22 + $0x1a4] ss:$16 sps:$4 sm:$0xff]   ;;  %v2411_v62 = vld [vmem:[%s3100_s22 + $0x1a0] ss:$16 sps:$4 sm:$0xff]  }
  0xb1   : > { %736 = vmatprep.subr.bf16.mxu1 %v2331_v27  ;;  %1204 = vmatprep.subr.bf16.mxu0 %v2369_v35  ;;  %v2415_v0 = vld [vmem:[%s3100_s22 + $0x1c4] ss:$16 sps:$4 sm:$0xff]   ;;  %v2417_v2 = vld [vmem:[%s3100_s22 + $0x1c0] ss:$16 sps:$4 sm:$0xff]  }
  0xb2   : > { %v2421_v4 = vld [vmem:[%s3100_s22 + $0x1e4] ss:$16 sps:$4 sm:$0xff]   ;;  %v2423_v6 = vld [vmem:[%s3100_s22 + $0x1e0] ss:$16 sps:$4 sm:$0xff]  }
  0xb3   : > { %v2501_v17 = vld [vmem:[%s3102_s25 + $0x4] ss:$8 sps:$4 sm:$0xff]   ;;  %v2504_v19 = vld [vmem:[%s3102_s25 + $0x14] ss:$8 sps:$4 sm:$0xff]   ;;  %v2502_v20 = vld [vmem:[%s3102_s25 + $0x10] ss:$8 sps:$4 sm:$0xff]  }
  0xb4   : > { %737 = vmatpush1.bf16.msra.mxu1 %v2335_v28  ;;  %1205 = vmatpush1.bf16.msra.mxu0 %v2372_v37  ;;  %v2507_v22 = vld [vmem:[%s3102_s25 + $0x24] ss:$8 sps:$4 sm:$0xff]   ;;  %v2505_v25 = vld [vmem:[%s3102_s25 + $0x20] ss:$8 sps:$4 sm:$0xff]   ;;  %v2510_v27 = vld [vmem:[%s3102_s25 + $0x34] ss:$8 sps:$4 sm:$0xff]  }
  0xb5   : > { %738 = vmatprep.subr.bf16.mxu1 %v2337_v31  ;;  %1206 = vmatprep.subr.bf16.mxu0 %v2375_v39  ;;  %v2508_v28 = vld [vmem:[%s3102_s25 + $0x30] ss:$8 sps:$4 sm:$0xff]   ;;  %v2513_v30 = vld [vmem:[%s3102_s25 + $0x44] ss:$8 sps:$4 sm:$0xff]   ;;  %v2511_v32 = vld [vmem:[%s3102_s25 + $0x40] ss:$8 sps:$4 sm:$0xff]  }
  0xb6   : > { %v2435_v31 = vld [vmem:[%s3094_s19 + $0x14c] ss:$16 sps:$4 sm:$0xff]   ;;  %v2514_v37 = vld [vmem:[%s3102_s25 + $0x50] ss:$8 sps:$4 sm:$0xff]  }
  0xb7   : > { %v2516_v35 = vld [vmem:[%s3102_s25 + $0x54] ss:$8 sps:$4 sm:$0xff]   ;;  %v2519_v39 = vld [vmem:[%s3102_s25 + $0x64] ss:$8 sps:$4 sm:$0xff]  }
  0xb8   : > { %739 = vmatpush1.bf16.msra.mxu1 %v2341_v34  ;;  %1207 = vmatpush1.bf16.msra.mxu0 %v2378_v41  ;;  %v2433_v34 = vld [vmem:[%s3094_s19 + $0x148] ss:$16 sps:$4 sm:$0xff]  }
  0xb9   : > { %740 = vmatprep.subr.bf16.mxu1 %v2343_v36  ;;  %1208 = vmatprep.subr.bf16.mxu0 %v2385_v43  ;;  %v2438_v36 = vld [vmem:[%s3094_s19 + $0x16c] ss:$16 sps:$4 sm:$0xff]   ;;  %v2517_v41 = vld [vmem:[%s3102_s25 + $0x60] ss:$8 sps:$4 sm:$0xff]  }
  0xba   : > { %v2444_v43 = vld [vmem:[%s3094_s19 + $0x1ac] ss:$16 sps:$4 sm:$0xff]  }
  0xbc   : > { %741 = vmatpush1.bf16.msra.mxu1 %v2347_v38  ;;  %1209 = vmatpush1.bf16.msra.mxu0 %v2387_v45  ;;  %v2436_v38 = vld [vmem:[%s3094_s19 + $0x168] ss:$16 sps:$4 sm:$0xff]   ;;  %v2447_v45 = vld [vmem:[%s3094_s19 + $0x1cc] ss:$16 sps:$4 sm:$0xff]  }
  0xbd   : > { %742 = vmatprep.subr.bf16.mxu1 %v2349_v40  ;;  %1210 = vmatprep.subr.bf16.mxu0 %v2391_v47  ;;  %v2441_v40 = vld [vmem:[%s3094_s19 + $0x18c] ss:$16 sps:$4 sm:$0xff]  }
  0xbe   : > { %v2450_v47 = vld [vmem:[%s3094_s19 + $0x1ec] ss:$16 sps:$4 sm:$0xff]  }
  0xc0   : > { %743 = vmatpush1.bf16.msra.mxu1 %v2353_v42  ;;  %1211 = vmatpush1.bf16.msra.mxu0 %v2393_v49  ;;  %v2439_v42 = vld [vmem:[%s3094_s19 + $0x188] ss:$16 sps:$4 sm:$0xff]   ;;  %v2453_v49 = vld [vmem:[%s3100_s22 + $0xc] ss:$16 sps:$4 sm:$0xff]  }
  0xc1   : > { %744 = vmatprep.subr.bf16.mxu1 %v2355_v44  ;;  %1212 = vmatprep.subr.bf16.mxu0 %v2397_v51  ;;  %v2442_v44 = vld [vmem:[%s3094_s19 + $0x1a8] ss:$16 sps:$4 sm:$0xff]   ;;  %v2456_v51 = vld [vmem:[%s3100_s22 + $0x2c] ss:$16 sps:$4 sm:$0xff]  }
  0xc4   : > { %745 = vmatpush1.bf16.msra.mxu1 %v2359_v46  ;;  %1213 = vmatpush1.bf16.msra.mxu0 %v2399_v53  ;;  %v2445_v46 = vld [vmem:[%s3094_s19 + $0x1c8] ss:$16 sps:$4 sm:$0xff]   ;;  %v2459_v53 = vld [vmem:[%s3100_s22 + $0x4c] ss:$16 sps:$4 sm:$0xff]  }
  0xc5   : > { %746 = vmatprep.subr.bf16.mxu1 %v2361_v48  ;;  %1214 = vmatprep.subr.bf16.mxu0 %v2403_v55  ;;  %v2448_v48 = vld [vmem:[%s3094_s19 + $0x1e8] ss:$16 sps:$4 sm:$0xff]   ;;  %v2462_v55 = vld [vmem:[%s3100_s22 + $0x6c] ss:$16 sps:$4 sm:$0xff]  }
  0xc8   : > { %747 = vmatpush1.bf16.msra.mxu1 %v2365_v50  ;;  %1215 = vmatpush1.bf16.msra.mxu0 %v2405_v57  ;;  %v2451_v50 = vld [vmem:[%s3100_s22 + $0x8] ss:$16 sps:$4 sm:$0xff]   ;;  %v2465_v57 = vld [vmem:[%s3100_s22 + $0x8c] ss:$16 sps:$4 sm:$0xff]  }
  0xc9   : > { %748 = vmatprep.subr.bf16.mxu1 %v2367_v52  ;;  %1216 = vmatprep.subr.bf16.mxu0 %v2409_v59  ;;  %v2454_v52 = vld [vmem:[%s3100_s22 + $0x28] ss:$16 sps:$4 sm:$0xff]  }
  0xca   : > { %v2466_v59 = vld [vmem:[%s3100_s22 + $0xa8] ss:$16 sps:$4 sm:$0xff]  }
  0xcc   : > { %749 = vmatpush1.bf16.msra.mxu1 %v2371_v54  ;;  %1217 = vmatpush1.bf16.msra.mxu0 %v2411_v62  ;;  %v2457_v54 = vld [vmem:[%s3100_s22 + $0x48] ss:$16 sps:$4 sm:$0xff]   ;;  %v2522_v62 = vld [vmem:[%s3102_s25 + $0x74] ss:$8 sps:$4 sm:$0xff]  }
  0xcd   : > { %750 = vmatprep.subr.bf16.mxu1 %v2373_v56  ;;  %1218 = vmatprep.subr.bf16.mxu0 %v2415_v0  ;;  %v2460_v56 = vld [vmem:[%s3100_s22 + $0x68] ss:$16 sps:$4 sm:$0xff]  }
  0xce   : > { %v2469_v0 = vld [vmem:[%s3100_s22 + $0xc8] ss:$16 sps:$4 sm:$0xff]  }
  0xd0   : > { %751 = vmatpush1.bf16.msra.mxu1 %v2377_v58  ;;  %1219 = vmatpush1.bf16.msra.mxu0 %v2417_v2  ;;  %v2463_v58 = vld [vmem:[%s3100_s22 + $0x88] ss:$16 sps:$4 sm:$0xff]   ;;  %v2525_v2 = vld [vmem:[%s3102_s25 + $0x84] ss:$8 sps:$4 sm:$0xff]  }
  0xd1   : > { %763 = vmatprep.subr.bf16.mxu1 %v2384_v60  ;;  %1220 = vmatprep.subr.bf16.mxu0 %v2421_v4  ;;  %v2471_v60 = vld [vmem:[%s3100_s22 + $0xcc] ss:$16 sps:$4 sm:$0xff]   ;;  %v2472_v4 = vld [vmem:[%s3100_s22 + $0xe8] ss:$16 sps:$4 sm:$0xff]  }
  0xd3   : > { %753 = vmatmul.mubr.bf16.vlgmr.msra.gmra.mrb[0].mxu1 %v3172_v61 }
  0xd4   : > { %764 = vmatpush1.bf16.msra.mxu1 %v2382_v63  ;;  %795 = vmatprep.mubr.bf16.mxu1 %v3141_v33  ;;  %v2520_v63 = vld [vmem:[%s3102_s25 + $0x70] ss:$8 sps:$4 sm:$0xff]  }
  0xd5   : > { %765 = vmatprep.subr.bf16.mxu1 %v2390_v1  ;;  %1221 = vmatpush1.bf16.msra.mxu0 %v2423_v6  ;;  %v2474_v1 = vld [vmem:[%s3100_s22 + $0xec] ss:$16 sps:$4 sm:$0xff]  }
  0xd6   : > { %1728 = vmatprep.subr.bf16.mxu0 %v2501_v17  ;;  %v2528_v6 = vld [vmem:[%s3102_s25 + $0x94] ss:$8 sps:$4 sm:$0xff]  }
  0xd7   : > { %v2486_v17 = vld [vmem:[%s3100_s22 + $0x16c] ss:$16 sps:$4 sm:$0xff]  }
  0xd8   : > { %766 = vmatpush1.bf16.msra.mxu1 %v2388_v3  ;;  %1223 = vmatmul.mubr.bf16.vlgmr.msra.gmra.mrb[0].mxu0 %v3172_v61  ;;  %v2523_v3 = vld [vmem:[%s3102_s25 + $0x80] ss:$8 sps:$4 sm:$0xff]  }
  0xd9   : > { %767 = vmatprep.subr.bf16.mxu1 %v2396_v5  ;;  %1729 = vmatpush1.bf16.msra.mxu0 %v2499_v16  ;;  %v2477_v5 = vld [vmem:[%s3100_s22 + $0x10c] ss:$16 sps:$4 sm:$0xff]   ;;  %v2481_v16 = vld [vmem:[%s3100_s22 + $0x148] ss:$16 sps:$4 sm:$0xff]  }
  0xda   : > { %1730 = vmatprep.subr.bf16.mxu0 %v2504_v19  ;;  %v2535_v19 = vld [vmem:[%s3102_s25 + $0xc0] ss:$8 sps:$4 sm:$0xff]  }
  0xdc   : > { %768 = vmatpush1.bf16.msra.mxu1 %v2394_v7  ;;  %v2526_v7 = vld [vmem:[%s3102_s25 + $0x90] ss:$8 sps:$4 sm:$0xff]  }
  0xdd   : > { %769 = vmatprep.subr.bf16.mxu1 %v2402_v8  ;;  %1731 = vmatpush1.bf16.msra.mxu0 %v2502_v20  ;;  %v2475_v8 = vld [vmem:[%s3100_s22 + $0x108] ss:$16 sps:$4 sm:$0xff]  }
  0xde   : > { %1732 = vmatprep.subr.bf16.mxu0 %v2507_v22  ;;  %v2484_v20 = vld [vmem:[%s3100_s22 + $0x168] ss:$16 sps:$4 sm:$0xff]   ;;  %v2540_v22 = vld [vmem:[%s3102_s25 + $0xd4] ss:$8 sps:$4 sm:$0xff]  }
  0xe0   : > { %770 = vmatpush1.bf16.msra.mxu1 %v2400_v9  ;;  %v2480_v9 = vld [vmem:[%s3100_s22 + $0x12c] ss:$16 sps:$4 sm:$0xff]  }
  0xe1   : > { %771 = vmatprep.subr.bf16.mxu1 %v2408_v10  ;;  %1733 = vmatpush1.bf16.msra.mxu0 %v2505_v25  ;;  %v2531_v10 = vld [vmem:[%s3102_s25 + $0xa4] ss:$8 sps:$4 sm:$0xff]  }
  0xe2   : > { %1734 = vmatprep.subr.bf16.mxu0 %v2510_v27  ;;  %v2492_v25 = vld [vmem:[%s3100_s22 + $0x1ac] ss:$16 sps:$4 sm:$0xff]   ;;  %v2541_v27 = vld [vmem:[%s3102_s25 + $0xe0] ss:$8 sps:$4 sm:$0xff]  }
  0xe4   : > { %772 = vmatpush1.bf16.msra.mxu1 %v2406_v11  ;;  %v2529_v11 = vld [vmem:[%s3102_s25 + $0xa0] ss:$8 sps:$4 sm:$0xff]  }
  0xe5   : > { %773 = vmatprep.subr.bf16.mxu1 %v2414_v12  ;;  %1735 = vmatpush1.bf16.msra.mxu0 %v2508_v28  ;;  %v2478_v12 = vld [vmem:[%s3100_s22 + $0x128] ss:$16 sps:$4 sm:$0xff]  }
  0xe6   : > { %1736 = vmatprep.subr.bf16.mxu0 %v2513_v30  ;;  %v2490_v28 = vld [vmem:[%s3100_s22 + $0x1a8] ss:$16 sps:$4 sm:$0xff]   ;;  %v2546_v30 = vld [vmem:[%s3102_s25 + $0xf4] ss:$8 sps:$4 sm:$0xff]  }
  0xe8   : > { %774 = vmatpush1.bf16.msra.mxu1 %v2412_v13  ;;  %v2483_v13 = vld [vmem:[%s3100_s22 + $0x14c] ss:$16 sps:$4 sm:$0xff]  }
  0xe9   : > { %775 = vmatprep.subr.bf16.mxu1 %v2420_v14  ;;  %1737 = vmatpush1.bf16.msra.mxu0 %v2511_v32  ;;  %v2534_v14 = vld [vmem:[%s3102_s25 + $0xb4] ss:$8 sps:$4 sm:$0xff]   ;;  %v2493_v32 = vld [vmem:[%s3100_s22 + $0x1c8] ss:$16 sps:$4 sm:$0xff]  }
  0xea   : > { %1738 = vmatprep.subr.bf16.mxu0 %v2516_v35  ;;  %v2496_v35 = vld [vmem:[%s3100_s22 + $0x1e8] ss:$16 sps:$4 sm:$0xff]  }
  0xec   : > { %776 = vmatpush1.bf16.msra.mxu1 %v2418_v15  ;;  %v2532_v15 = vld [vmem:[%s3102_s25 + $0xb0] ss:$8 sps:$4 sm:$0xff]  }
  0xed   : > { %777 = vmatprep.subr.bf16.mxu1 %v2426_v18  ;;  %1739 = vmatpush1.bf16.msra.mxu0 %v2514_v37  ;;  %v2537_v18 = vld [vmem:[%s3102_s25 + $0xc4] ss:$8 sps:$4 sm:$0xff]  }
  0xee   : > { %1740 = vmatprep.subr.bf16.mxu0 %v2519_v39 }
  0xf0   : > { %778 = vmatpush1.bf16.msra.mxu1 %v2424_v21  ;;  %v2489_v21 = vld [vmem:[%s3100_s22 + $0x18c] ss:$16 sps:$4 sm:$0xff]  }
  0xf1   : > { %779 = vmatprep.subr.bf16.mxu1 %v2429_v23  ;;  %1741 = vmatpush1.bf16.msra.mxu0 %v2517_v41  ;;  %v2538_v23 = vld [vmem:[%s3102_s25 + $0xd0] ss:$8 sps:$4 sm:$0xff]  }
  0xf2   : > { %1742 = vmatprep.subr.bf16.mxu0 %v2522_v62 }
  0xf4   : > { %780 = vmatpush1.bf16.msra.mxu1 %v2427_v24  ;;  %v2487_v24 = vld [vmem:[%s3100_s22 + $0x188] ss:$16 sps:$4 sm:$0xff]  }
  0xf5   : > { %781 = vmatprep.subr.bf16.mxu1 %v2432_v26  ;;  %1743 = vmatpush1.bf16.msra.mxu0 %v2520_v63  ;;  %v2543_v26 = vld [vmem:[%s3102_s25 + $0xe4] ss:$8 sps:$4 sm:$0xff]  }
  0xf6   : > { %1744 = vmatprep.subr.bf16.mxu0 %v2525_v2 }
  0xf8   : > { %782 = vmatpush1.bf16.msra.mxu1 %v2430_v29  ;;  %v2495_v29 = vld [vmem:[%s3100_s22 + $0x1cc] ss:$16 sps:$4 sm:$0xff]  }
  0xf9   : > { %783 = vmatprep.subr.bf16.mxu1 %v2435_v31  ;;  %1745 = vmatpush1.bf16.msra.mxu0 %v2523_v3  ;;  %v2544_v31 = vld [vmem:[%s3102_s25 + $0xf0] ss:$8 sps:$4 sm:$0xff]  }
  0xfa   : > { %1746 = vmatprep.subr.bf16.mxu0 %v2528_v6  ;;  %v2547_v6 = vld [vmem:[%s3102_s25 + $0x100] ss:$8 sps:$4 sm:$0xff]  }
  0xfc   : > { %784 = vmatpush1.bf16.msra.mxu1 %v2433_v34  ;;  %v2498_v34 = vld [vmem:[%s3100_s22 + $0x1ec] ss:$16 sps:$4 sm:$0xff]  }
  0xfd   : > { %785 = vmatprep.subr.bf16.mxu1 %v2438_v36  ;;  %1747 = vmatpush1.bf16.msra.mxu0 %v2526_v7  ;;  %v2549_v36 = vld [vmem:[%s3102_s25 + $0x104] ss:$8 sps:$4 sm:$0xff]   ;;  %v2552_v7 = vld [vmem:[%s3102_s25 + $0x114] ss:$8 sps:$4 sm:$0xff]  }
  0xfe   : > { %1748 = vmatprep.subr.bf16.mxu0 %v2531_v10  ;;  %v2553_v10 = vld [vmem:[%s3102_s25 + $0x120] ss:$8 sps:$4 sm:$0xff]  }
 0x100   : > { %786 = vmatpush1.bf16.msra.mxu1 %v2436_v38 }
 0x101   : > { %787 = vmatprep.subr.bf16.mxu1 %v2441_v40  ;;  %1749 = vmatpush1.bf16.msra.mxu0 %v2529_v11  ;;  %v2558_v11 = vld [vmem:[%s3102_s25 + $0x134] ss:$8 sps:$4 sm:$0xff]  }
 0x102   : > { %1750 = vmatprep.subr.bf16.mxu0 %v2534_v14  ;;  %v2559_v14 = vld [vmem:[%s3102_s25 + $0x140] ss:$8 sps:$4 sm:$0xff]  }
 0x104   : > { %788 = vmatpush1.bf16.msra.mxu1 %v2439_v42 }
 0x105   : > { %789 = vmatprep.subr.bf16.mxu1 %v2444_v43  ;;  %1751 = vmatpush1.bf16.msra.mxu0 %v2532_v15  ;;  %v2564_v15 = vld [vmem:[%s3102_s25 + $0x154] ss:$8 sps:$4 sm:$0xff]  }
 0x106   : > { %1752 = vmatprep.subr.bf16.mxu0 %v2537_v18  ;;  %v2565_v18 = vld [vmem:[%s3102_s25 + $0x160] ss:$8 sps:$4 sm:$0xff]  }
 0x108   : > { %790 = vmatpush1.bf16.msra.mxu1 %v2442_v44 }
 0x109   : > { %791 = vmatprep.subr.bf16.mxu1 %v2447_v45  ;;  %1753 = vmatpush1.bf16.msra.mxu0 %v2535_v19  ;;  %v2570_v19 = vld [vmem:[%s3102_s25 + $0x174] ss:$8 sps:$4 sm:$0xff]  }
 0x10a   : > { %1754 = vmatprep.subr.bf16.mxu0 %v2540_v22 }
 0x10c   : > { %792 = vmatpush1.bf16.msra.mxu1 %v2445_v46 }
 0x10d   : > { %793 = vmatprep.subr.bf16.mxu1 %v2450_v47  ;;  %1755 = vmatpush1.bf16.msra.mxu0 %v2538_v23 }
 0x10e   : > { %1756 = vmatprep.subr.bf16.mxu0 %v2543_v26 }
 0x110   : > { %794 = vmatpush1.bf16.msra.mxu1 %v2448_v48 }
 0x111   : > { %1233 = vmatprep.subr.bf16.mxu1 %v2453_v49  ;;  %1757 = vmatpush1.bf16.msra.mxu0 %v2541_v27  ;;  %v2576_v27 = vld [vmem:[%s3102_s25 + $0x194] ss:$8 sps:$4 sm:$0xff]  }
 0x112   : > { %1758 = vmatprep.subr.bf16.mxu0 %v2546_v30  ;;  %v2577_v30 = vld [vmem:[%s3102_s25 + $0x1a0] ss:$8 sps:$4 sm:$0xff]  }
 0x113   : > { %796 = vmatmul.mubr.bf16.vlgmr.msra.gmra.mrb[4].mxu1 %v3172_v61 }
 0x114   : > { %1234 = vmatpush1.bf16.msra.mxu1 %v2451_v50  ;;  %1265 = vmatprep.mubr.bf16.mxu1 %v3141_v33  ;;  %v2468_v33 = vld [vmem:[%s3100_s22 + $0xac] ss:$16 sps:$4 sm:$0xff]  }
 0x115   : > { %1235 = vmatprep.subr.bf16.mxu1 %v2456_v51  ;;  %1759 = vmatpush1.bf16.msra.mxu0 %v2544_v31  ;;  %v2582_v31 = vld [vmem:[%s3102_s25 + $0x1b4] ss:$8 sps:$4 sm:$0xff]  }
 0x116   : > { %1771 = vmatprep.subr.bf16.mxu0 %v2549_v36  ;;  %v2588_v36 = vld [vmem:[%s3102_s25 + $0x1d4] ss:$8 sps:$4 sm:$0xff]  }
 0x118   : > { %1236 = vmatpush1.bf16.msra.mxu1 %v2454_v52 }
 0x119   : > { %1237 = vmatprep.subr.bf16.mxu1 %v2459_v53 }
 0x11c   : > { %1238 = vmatpush1.bf16.msra.mxu1 %v2457_v54 }
 0x11d   : > { %1239 = vmatprep.subr.bf16.mxu1 %v2462_v55 }
 0x120   : > { %1240 = vmatpush1.bf16.msra.mxu1 %v2460_v56 }
 0x121   : > { %1241 = vmatprep.subr.bf16.mxu1 %v2465_v57 }
 0x124   : > { %1242 = vmatpush1.bf16.msra.mxu1 %v2463_v58 }
 0x125   : > { %1243 = vmatprep.subr.bf16.mxu1 %v2468_v33 }
 0x128   : > { %1244 = vmatpush1.bf16.msra.mxu1 %v2466_v59 }
 0x129   : > { %1245 = vmatprep.subr.bf16.mxu1 %v2471_v60 }
 0x12c   : > { %1246 = vmatpush1.bf16.msra.mxu1 %v2469_v0 }
 0x12d   : > { %1247 = vmatprep.subr.bf16.mxu1 %v2474_v1 }
 0x130   : > { %1248 = vmatpush1.bf16.msra.mxu1 %v2472_v4 }
 0x131   : > { %1249 = vmatprep.subr.bf16.mxu1 %v2477_v5 }
 0x134   : > { %1250 = vmatpush1.bf16.msra.mxu1 %v2475_v8  ;;  %v2550_v8 = vld [vmem:[%s3102_s25 + $0x110] ss:$8 sps:$4 sm:$0xff]  }
 0x135   : > { %1251 = vmatprep.subr.bf16.mxu1 %v2480_v9  ;;  %v2555_v9 = vld [vmem:[%s3102_s25 + $0x124] ss:$8 sps:$4 sm:$0xff]  }
 0x138   : > { %1252 = vmatpush1.bf16.msra.mxu1 %v2478_v12  ;;  %v2556_v12 = vld [vmem:[%s3102_s25 + $0x130] ss:$8 sps:$4 sm:$0xff]  }
 0x139   : > { %1253 = vmatprep.subr.bf16.mxu1 %v2483_v13  ;;  %v2561_v13 = vld [vmem:[%s3102_s25 + $0x144] ss:$8 sps:$4 sm:$0xff]  }
 0x13c   : > { %1254 = vmatpush1.bf16.msra.mxu1 %v2481_v16  ;;  %v2562_v16 = vld [vmem:[%s3102_s25 + $0x150] ss:$8 sps:$4 sm:$0xff]  }
 0x13d   : > { %1255 = vmatprep.subr.bf16.mxu1 %v2486_v17  ;;  %v2567_v17 = vld [vmem:[%s3102_s25 + $0x164] ss:$8 sps:$4 sm:$0xff]  }
 0x140   : > { %1256 = vmatpush1.bf16.msra.mxu1 %v2484_v20  ;;  %v2568_v20 = vld [vmem:[%s3102_s25 + $0x170] ss:$8 sps:$4 sm:$0xff]  }
 0x141   : > { %1257 = vmatprep.subr.bf16.mxu1 %v2489_v21  ;;  %v2573_v21 = vld [vmem:[%s3102_s25 + $0x184] ss:$8 sps:$4 sm:$0xff]  }
 0x144   : > { %1258 = vmatpush1.bf16.msra.mxu1 %v2487_v24 }
 0x145   : > { %1259 = vmatprep.subr.bf16.mxu1 %v2492_v25  ;;  %v2571_v25 = vld [vmem:[%s3102_s25 + $0x180] ss:$8 sps:$4 sm:$0xff]  }
 0x148   : > { %1260 = vmatpush1.bf16.msra.mxu1 %v2490_v28  ;;  %v2574_v28 = vld [vmem:[%s3102_s25 + $0x190] ss:$8 sps:$4 sm:$0xff]  }
 0x149   : > { %1261 = vmatprep.subr.bf16.mxu1 %v2495_v29  ;;  %v2579_v29 = vld [vmem:[%s3102_s25 + $0x1a4] ss:$8 sps:$4 sm:$0xff]  }
 0x14c   : > { %1262 = vmatpush1.bf16.msra.mxu1 %v2493_v32  ;;  %v2580_v32 = vld [vmem:[%s3102_s25 + $0x1b0] ss:$8 sps:$4 sm:$0xff]  }
 0x14d   : > { %1263 = vmatprep.subr.bf16.mxu1 %v2498_v34  ;;  %v2585_v34 = vld [vmem:[%s3102_s25 + $0x1c4] ss:$8 sps:$4 sm:$0xff]  }
 0x150   : > { %1264 = vmatpush1.bf16.msra.mxu1 %v2496_v35  ;;  %v2583_v35 = vld [vmem:[%s3102_s25 + $0x1c0] ss:$8 sps:$4 sm:$0xff]  }
 0x153   : > { %1266 = vmatmul.mubr.bf16.vlgmr.msra.gmra.mrb[8].mxu1 %v3172_v61 }
 0x1a6   : > { %v754_v37 = vpop.f32.mrb[0].mxu1 }
 0x1a7   : > { %v2129_v38 = vmul.f32 -1.442695, %v754_v37  ;;  %v756_v39 = vpop.f32.mrb[1].mxu1 }
 0x1a8   : > { %v2130_v40 = vmul.f32 -1.442695, %v756_v39  ;;  %v758_v41 = vpop.f32.mrb[2].mxu1 }
 0x1a9   : > { %2595 = vpow2.f32 %v2129_v38  ;;  %v2133_v42 = vmul.f32 -1.442695, %v758_v41  ;;  %v760_v43 = vpop.f32.mrb[3].mxu1  ;;  %v2591_v38 = vld [vmem:[%s3102_s25 + $0x1e4] ss:$8 sps:$4 sm:$0xff]  }
 0x1aa   : > { %2597 = vpow2.f32 %v2130_v40  ;;  %v2134_v44 = vmul.f32 -1.442695, %v760_v43  ;;  %v2594_v40 = vld [vmem:[%s3102_s25 + $0x1f4] ss:$8 sps:$4 sm:$0xff]  }
 0x1ab   : > { %2599 = vpow2.f32 %v2133_v42  ;;  %v1224_v45 = vpop.f32.mrb[0].mxu0 }
 0x1ac   : > { %2601 = vpow2.f32 %v2134_v44  ;;  %v1226_v46 = vpop.f32.mrb[1].mxu0 }
 0x1ad   : > { %v1228_v48 = vpop.f32.mrb[2].mxu0 }
 0x1ae   : > { %v1230_v50 = vpop.f32.mrb[3].mxu0 }
 0x1b3   : > { %v2596_v47 = vpop.eup %2595 }
 0x1b4   : > { %v2598_v49 = vpop.eup %2597  ;;  %v1300_v61 = vadd.f32 1.0, %v2596_v47 }
 0x1b5   : > { %v2600_v51 = vpop.eup %2599  ;;  %v1301_v52 = vadd.f32 1.0, %v2598_v49 }
 0x1b6   : > { %v2602_v53 = vpop.eup %2601  ;;  %2603 = vrcp.f32 %v1300_v61  ;;  %v1304_v54 = vadd.f32 1.0, %v2600_v51 }
 0x1b7   : > { %2605 = vrcp.f32 %v1301_v52  ;;  %v1305_v55 = vadd.f32 1.0, %v2602_v53 }
 0x1b8   : > { %2607 = vrcp.f32 %v1304_v54 }
 0x1b9   : > { %2609 = vrcp.f32 %v1305_v55 }
 0x1c0   : > { %v2604_v56 = vpop.eup %2603 }
 0x1c1   : > { %v2606_v57 = vpop.eup %2605  ;;  %v1324_v58 = vmul.f32 %v2604_v56, %v754_v37  ;;  %v2586_v37 = vld [vmem:[%s3102_s25 + $0x1d0] ss:$8 sps:$4 sm:$0xff]  }
 0x1c2   : > { %v2608_v33 = vpop.eup %2607  ;;  %v1325_v59 = vmul.f32 %v2606_v57, %v756_v39  ;;  %v2589_v39 = vld [vmem:[%s3102_s25 + $0x1e0] ss:$8 sps:$4 sm:$0xff]  }
 0x1c3   : > { %v2610_v60 = vpop.eup %2609  ;;  %v1328_v62 = vmul.f32 %v2608_v33, %v758_v41  ;;  %v1332_v63 = vmul.f32 %v1324_v58, %v1224_v45 }
 0x1c4   : > { %v1329_v0 = vmul.f32 %v2610_v60, %v760_v43  ;;  %v1333_v1 = vmul.f32 %v1325_v59, %v1226_v46  ;;  %v2592_v43 = vld [vmem:[%s3102_s25 + $0x1f0] ss:$8 sps:$4 sm:$0xff]  }
 0x1c5   : > { %v1336_v2 = vmul.f32 %v1328_v62, %v1228_v48 }
 0x1c6   : > { %v1337_v3 = vmul.f32 %v1329_v0, %v1230_v50 }
 0x1c7   : > { %v1340_v4 = vpack.c.bf16 %v1336_v2, %v1332_v63 }
 0x1c8   : > { %v1341_v5 = vpack.c.bf16 %v1337_v3, %v1333_v1 }
 0x1ca   : > { %1760 = vmatprep.mubr.bf16.mxu0 %v1341_v5 }
 0x1cb   : > { %1761 = vmatmul.mubr.bf16.vlgmr.msra.gmra.mrb[4].mxu0 %v1340_v4 }
 0x1cc   : > { %1772 = vmatpush1.bf16.msra.mxu0 %v2547_v6 }
 0x1cd   : > { %1773 = vmatprep.subr.bf16.mxu0 %v2552_v7 }
 0x1d0   : > { %1774 = vmatpush1.bf16.msra.mxu0 %v2550_v8 }
 0x1d1   : > { %1775 = vmatprep.subr.bf16.mxu0 %v2555_v9 }
 0x1d4   : > { %1776 = vmatpush1.bf16.msra.mxu0 %v2553_v10 }
 0x1d5   : > { %1777 = vmatprep.subr.bf16.mxu0 %v2558_v11 }
 0x1d8   : > { %1778 = vmatpush1.bf16.msra.mxu0 %v2556_v12 }
 0x1d9   : > { %1779 = vmatprep.subr.bf16.mxu0 %v2561_v13 }
 0x1dc   : > { %1780 = vmatpush1.bf16.msra.mxu0 %v2559_v14 }
 0x1dd   : > { %1781 = vmatprep.subr.bf16.mxu0 %v2564_v15 }
 0x1e0   : > { %1782 = vmatpush1.bf16.msra.mxu0 %v2562_v16 }
 0x1e1   : > { %1783 = vmatprep.subr.bf16.mxu0 %v2567_v17 }
 0x1e4   : > { %1784 = vmatpush1.bf16.msra.mxu0 %v2565_v18 }
 0x1e5   : > { %1785 = vmatprep.subr.bf16.mxu0 %v2570_v19 }
 0x1e6   : > { %v797_v22 = vpop.f32.mrb[4].mxu1 }
 0x1e7   : > { %v799_v23 = vpop.f32.mrb[5].mxu1  ;;  %v2131_v41 = vmul.f32 -1.442695, %v797_v22 }
 0x1e8   : > { %v801_v24 = vpop.f32.mrb[6].mxu1  ;;  %1786 = vmatpush1.bf16.msra.mxu0 %v2568_v20  ;;  %v2132_v42 = vmul.f32 -1.442695, %v799_v23 }
 0x1e9   : > { %v803_v26 = vpop.f32.mrb[7].mxu1  ;;  %1787 = vmatprep.subr.bf16.mxu0 %v2573_v21  ;;  %v2135_v44 = vmul.f32 -1.442695, %v801_v24  ;;  %2611 = vpow2.f32 %v2131_v41 }
 0x1ea   : > { %v2136_v45 = vmul.f32 -1.442695, %v803_v26  ;;  %2613 = vpow2.f32 %v2132_v42 }
 0x1eb   : > { %2615 = vpow2.f32 %v2135_v44 }
 0x1ec   : > { %1788 = vmatpush1.bf16.msra.mxu0 %v2571_v25  ;;  %2617 = vpow2.f32 %v2136_v45 }
 0x1ed   : > { %1789 = vmatprep.subr.bf16.mxu0 %v2576_v27 }
 0x1f0   : > { %1790 = vmatpush1.bf16.msra.mxu0 %v2574_v28 }
 0x1f1   : > { %1791 = vmatprep.subr.bf16.mxu0 %v2579_v29 }
 0x1f3   : > { %v2612_v46 = vpop.eup %2611 }
 0x1f4   : > { %1792 = vmatpush1.bf16.msra.mxu0 %v2577_v30  ;;  %v2614_v47 = vpop.eup %2613  ;;  %v1302_v61 = vadd.f32 1.0, %v2612_v46 }
 0x1f5   : > { %1793 = vmatprep.subr.bf16.mxu0 %v2582_v31  ;;  %v2616_v48 = vpop.eup %2615  ;;  %v1303_v50 = vadd.f32 1.0, %v2614_v47 }
 0x1f6   : > { %v2618_v49 = vpop.eup %2617  ;;  %v1306_v51 = vadd.f32 1.0, %v2616_v48  ;;  %2619 = vrcp.f32 %v1302_v61 }
 0x1f7   : > { %v1307_v52 = vadd.f32 1.0, %v2618_v49  ;;  %2621 = vrcp.f32 %v1303_v50 }
 0x1f8   : > { %1794 = vmatpush1.bf16.msra.mxu0 %v2580_v32  ;;  %2623 = vrcp.f32 %v1306_v51 }
 0x1f9   : > { %1795 = vmatprep.subr.bf16.mxu0 %v2585_v34  ;;  %2625 = vrcp.f32 %v1307_v52 }
 0x1fc   : > { %1796 = vmatpush1.bf16.msra.mxu0 %v2583_v35 }
 0x1fd   : > { %1797 = vmatprep.subr.bf16.mxu0 %v2588_v36 }
 0x200   : > { %1798 = vmatpush1.bf16.msra.mxu0 %v2586_v37  ;;  %v2620_v53 = vpop.eup %2619 }
 0x201   : > { %1799 = vmatprep.subr.bf16.mxu0 %v2591_v38  ;;  %v2622_v54 = vpop.eup %2621  ;;  %v1326_v57 = vmul.f32 %v2620_v53, %v797_v22 }
 0x202   : > { %v2624_v55 = vpop.eup %2623  ;;  %v1327_v58 = vmul.f32 %v2622_v54, %v799_v23 }
 0x203   : > { %v2626_v56 = vpop.eup %2625  ;;  %v1330_v59 = vmul.f32 %v2624_v55, %v801_v24 }
 0x204   : > { %1800 = vmatpush1.bf16.msra.mxu0 %v2589_v39  ;;  %v1331_v63 = vmul.f32 %v2626_v56, %v803_v26 }
 0x205   : > { %1801 = vmatprep.subr.bf16.mxu0 %v2594_v40 }
 0x208   : > { %1802 = vmatpush1.bf16.msra.mxu0 %v2592_v43 }
 0x226   : > { %v1267_v33 = vpop.f32.mrb[8].mxu1 }
 0x227   : > { %v1334_v60 = vmul.f32 %v1326_v57, %v1267_v33  ;;  %v1269_v62 = vpop.f32.mrb[9].mxu1 }
 0x228   : > { %v1335_v0 = vmul.f32 %v1327_v58, %v1269_v62  ;;  %v1271_v1 = vpop.f32.mrb[10].mxu1 }
 0x229   : > { %v1338_v2 = vmul.f32 %v1330_v59, %v1271_v1  ;;  %v1273_v3 = vpop.f32.mrb[11].mxu1 }
 0x22a   : > { %v1339_v4 = vmul.f32 %v1331_v63, %v1273_v3 }
 0x22b   : > { %v1342_v5 = vpack.c.bf16 %v1338_v2, %v1334_v60 }
 0x22c   : > { %v1343_v6 = vpack.c.bf16 %v1339_v4, %v1335_v0 }
 0x22e   : > { %1803 = vmatprep.mubr.bf16.mxu0 %v1343_v6 }
 0x22f   : > { %1804 = vmatmul.mubr.bf16.vlgmr.msra.gmra.mrb[4].mxu0 %v1342_v5 }
 0x2ff   : > { %1817 = sbr.rel (%p2201_p13) target bundleno = 775 (0x307), region = 56 }
 0x302   : > { %v1805_v7 = vpop.f32.mrb[4].mxu0 }
 0x303   : > { %v1807_v8 = vpop.f32.mrb[5].mxu0  ;;  %1818 = vst [vmem:[#allocation2] sm:$0xff] (!%p2201_p13), %v1805_v7 }
 0x304   : > { %v1809_v9 = vpop.f32.mrb[6].mxu0  ;;  %1819 = vst [vmem:[#allocation2 + $0x8] sm:$0xff] (!%p2201_p13), %v1807_v8 }
 0x305   : > { %v1811_v10 = vpop.f32.mrb[7].mxu0  ;;  %1820 = vst [vmem:[#allocation2 + $0x10] sm:$0xff] (!%p2201_p13), %v1809_v9 }
 0x306   : > { %1821 = vst [vmem:[#allocation2 + $0x18] sm:$0xff] %v1811_v10 }
 0x307 PF: > { %p2202_p1 = scmp.eq.s32.totalorder %s2825_s18, 0 }
 0x309   : > { %1825 = sbr.rel (%p2202_p1) target bundleno = 785 (0x311), region = 60 }
 0x30b   : > { %v1826_v11 = vld [vmem:[#allocation2] sm:$0xff] (!%p2202_p1) }
 0x30c   : > { %v1827_v12 = vld [vmem:[#allocation2 + $0x8] sm:$0xff] (!%p2202_p1)  ;;  %v1830_v14 = vadd.f32 (!%p2202_p1), %v1826_v11, %v1805_v7 }
 0x30d   : > { %v1828_v13 = vld [vmem:[#allocation2 + $0x10] sm:$0xff] (!%p2202_p1)  ;;  %v1831_v15 = vadd.f32 (!%p2202_p1), %v1827_v12, %v1807_v8  ;;  %v1829_v17 = vld [vmem:[#allocation2 + $0x18] sm:$0xff] (!%p2202_p1) }
 0x30e   : > { %v1832_v16 = vadd.f32 (!%p2202_p1), %v1828_v13, %v1809_v9  ;;  %v1833_v18 = vadd.f32 (!%p2202_p1), %v1829_v17, %v1811_v10  ;;  %1834 = vst [vmem:[#allocation2] sm:$0xff] (!%p2202_p1), %v1830_v14 }
 0x30f   : > { %1835 = vst [vmem:[#allocation2 + $0x8] sm:$0xff] (!%p2202_p1), %v1831_v15 }
 0x310   : > { %1836 = vst [vmem:[#allocation2 + $0x10] sm:$0xff] %v1832_v16  ;;  %1837 = vst [vmem:[#allocation2 + $0x18] sm:$0xff] %v1833_v18 }
 0x311 PF: > { %p2203_p4 = scmp.ne.s32.totalorder %s2825_s18, 1 }
 0x313   : > { %1841 = sbr.rel (%p2203_p4) target bundleno = 794 (0x31a), region = 64 }
 0x316   : > { %v1842_v19 = vld [vmem:[#allocation2] sm:$0xff] (!%p2203_p4) }
 0x317   : > { %v1843_v20 = vld [vmem:[#allocation2 + $0x8] sm:$0xff] (!%p2203_p4)  ;;  %v1844_v21 = vld [vmem:[#allocation2 + $0x10] sm:$0xff] (!%p2203_p4)  ;;  %1846 = vst [vmem:[#allocation11] sm:$0xff] (!%p2203_p4), %v1842_v19  ;;  %v1845_v22 = vld [vmem:[#allocation2 + $0x18] sm:$0xff] (!%p2203_p4) }
 0x318   : > { %1847 = vst [vmem:[#allocation11 + $0x8] sm:$0xff] (!%p2203_p4), %v1843_v20  ;;  %1848 = vst [vmem:[#allocation11 + $0x10] sm:$0xff] (!%p2203_p4), %v1844_v21 }
 0x319   : > { %1849 = vst [vmem:[#allocation11 + $0x18] sm:$0xff] (!%p2203_p4), %v1845_v22 }
 0x31a PF: > { %p2246_p2 = scmp.eq.s32.totalorder %s2970_s13, 1  ;;  %s2843_s14 = smov [#allocation11]  }
 0x31b   : > { %s1860_s24 = sshll.u32 %s2843_s14, 4  ;;  %s1861_s24 = int_to_ptr.vmem [resolvable:$true] %s1860_s24 }
 0x31c   : > { %s2745_s8 = scalar_lea.vmem %s1861_s24, 512  ;;  %p2752_p9 = scmp.lt.s32.totalorder %s1861_s24, %s1861_s24 }
 0x31d   : > { %p2746_p8 = scmp.ne.s32.totalorder %s1861_s24, %s2745_s8  ;;  %p2753_p12 = scmp.lt.s32.totalorder %s2745_s8, %s2745_s8 }
 0x31f   : > { %p2747_p3 = pnand %p2746_p8, %p2246_p2  ;;  %p2754_p10 = por %p2753_p12, %p2752_p9 }
 0x321   : > { %p2748_p7 = pneg %p2747_p3 }
 0x323   : > { %p2755_p6 = pnand %p2754_p10, %p2748_p7 }
 0x325   : > { %2758 = shalt.err (!%p2755_p6)
}
 0x326   : > { %s2759_s9 = scalar_lea.hbm %s3360_s4, 512 }
 0x327   : > { %p2760_p11 = scmp.ne.s32.totalorder %s3360_s4, %s2759_s9  ;;  %p2765_p13 = scmp.lt.u32.totalorder %s2759_s9, %s3360_s4 }
 0x329   : > { %p2761_p5 = pnand %p2760_p11, %p2246_p2 }
 0x32b   : > { %p2762_p0 = pneg %p2761_p5 }
 0x32d   : > { %p2767_p1 = pnand %p2765_p13, %p2762_p0 }
 0x32f   : > { %2770 = shalt.err (!%p2767_p1)
}
 0x330   : > { %s2844_s28 = smov 256   ;;  %s2845_s12 = smov 16  }
 0x331   : > { %2226 = dma.vmem_to_hbm [thread:$0]  (%p2246_p2), %s1861_s24, 512, %s3360_s4, [#allocation5], %s2844_s28, %s2844_s28, %s2845_s12  }
 0x332   : > { %2808 = dma.done.wait (%p2246_p2), [#allocation5], 512  }
 0x333   : > { %2810 = vsyncadd (%p2246_p2), [#allocation5], 4294966784 }
 0x334 PF: > { %s22_s20 = sadd.s32 1, %s2833_s20   ;;  %s3391_s18 = sld [smem:[#allocation16_spill]] }
 0x335   : > { %p19_p4 = scmp.ge.s32.totalorder %s22_s20, 4   ;;  %s3392_s19 = sld [smem:[#allocation17_spill]] }
 0x336   : > { %s3393_s15 = smov %s2817_s16  ;;  %s3394_s16 = smov %s2821_s17 }
 0x337   : > { %s3395_s17 = smov %s2917_s27  ;;  %21 = sbr.rel (!%p19_p4) target bundleno = 10 (0xa), region = 116 }
 0x33e   :  { %1876 = vsyncpa [#allocation4], 1 }
 0x33f   :  { %1878 = vsyncpa [#allocation4 + $0x1], 1 }
 0x340   :  { %1879 = vsyncpa [#allocation7], 1 }
 0x341   :  { %1881 = vsyncpa [#allocation7 + $0x1], 1 }
 0x342   :  { %1882 = vsyncpa [#allocation10], 1 }
 0x343   :  { %1884 = vsyncpa [#allocation10 + $0x1], 1 }
 0x344   :  { %1885 = vsyncpa [#allocation5], 1 }
 0x345   :  { %1887 = vsyncpa [#allocation5 + $0x1], 1 }

</bundles_post_ra>
